<compile_context>
chip_gen: v5e
topology: v5e:2x2
jax: 0.10.0
libtpu: 0.0.40
codegen_flags: <defaults>
</compile_context>

<pallas_src>
import jax
import jax.numpy as jnp
from jax.experimental import pallas as pl
from jax.experimental.pallas import tpu as pltpu


def _make_exc_kernel(hw, chunk):
    """Builds the kernel closure over static H*W and chunk size."""
    tail = hw % chunk  # static; 0 means no masking code is emitted at all

    def kernel(prob_ref, tgt_ref,                     # inputs  (C,chunk),(1,chunk)
               log_out, int_out, p2_out, et_out,      # outputs (C,1)x3,(1,1)
               acc_log, acc_int, acc_p2, acc_et):     # scratch (C,1)x3,(1,1)
        k = pl.program_id(1)

        @pl.when(k == 0)
        def _():
            acc_log[...] = jnp.zeros_like(acc_log)
            acc_int[...] = jnp.zeros_like(acc_int)
            acc_p2[...] = jnp.zeros_like(acc_p2)
            acc_et[...] = jnp.zeros_like(acc_et)

        p = prob_ref[...].astype(jnp.float32)         # (C, chunk)
        t = tgt_ref[...]                              # (1, chunk), native dtype
        et = (t > 0).astype(jnp.float32)              # excluse_label, (1, chunk)

        if tail:  # mask ragged last block (static branch)
            lane = jax.lax.broadcasted_iota(jnp.int32, (1, chunk), 1)
            valid = (k * chunk + lane) < hw           # (1, chunk)
            et = jnp.where(valid, et, 0.0)
            p = jnp.where(jnp.broadcast_to(valid, p.shape), p, 0.0)

        # Hoist the (1,chunk)->(C,chunk) broadcast once and reuse it.
        etb = jnp.broadcast_to(et, p.shape)

        # NOTE: log(p + 1.0) matches the PyTorch module exactly (epsilon=1.0);
        # kept as an explicit add for robust Mosaic lowering.
        acc_log[...] += jnp.sum(etb * jnp.log(p + 1.0), axis=-1, keepdims=True)
        acc_int[...] += jnp.sum(etb * p, axis=-1, keepdims=True)
        acc_p2[...] += jnp.sum(p * p, axis=-1, keepdims=True)
        acc_et[...] += jnp.sum(et, axis=-1, keepdims=True)

        @pl.when(k == pl.num_programs(1) - 1)
        def _():
            log_out[...] = acc_log[...]
            int_out[...] = acc_int[...]
            p2_out[...] = acc_p2[...]
            et_out[...] = acc_et[...]

    return kernel


def _pick_chunk(hw, c, itemsize, target_block_bytes=2 * 1024 * 1024):
    """Lane-chunk so the prob block is ~target_block_bytes (multiple of 128)."""
    chunk = max(128, (target_block_bytes // (c * itemsize)) // 128 * 128)
    if chunk >= hw:
        return hw  # full extent is always a legal last-dim block
    return chunk


def exc_loss(prob, target, class_flag, *, target_block_bytes=2 * 1024 * 1024):
    """Pallas implementation of exc_loss.forward(prob, target, class_flag)."""
    n, c, h, w = prob.shape
    assert target.shape == (n, 1, h, w), "target must be [N, 1, H, W]"
    hw = h * w

    # Free reshapes — no transpose, no pad, no pre-cast.
    prob3 = jnp.reshape(prob, (n, c, hw))
    tgt3 = jnp.reshape(target, (n, 1, hw))

    itemsize = jnp.dtype(prob.dtype).itemsize
    chunk = _pick_chunk(hw, c, itemsize, target_block_bytes)
    n_chunks = pl.cdiv(hw, chunk)

    kernel = _make_exc_kernel(hw, chunk)

    cls_out_spec = pl.BlockSpec((None, c, 1), lambda i, k: (i, 0, 0))
    et_out_spec = pl.BlockSpec((None, 1, 1), lambda i, k: (i, 0, 0))

    s_log_n, s_int_n, s_p2_n, s_et_n = pl.pallas_call(
        kernel,
        out_shape=(
            jax.ShapeDtypeStruct((n, c, 1), jnp.float32),  # sum et*log(p+1) per (n,c)
            jax.ShapeDtypeStruct((n, c, 1), jnp.float32),  # sum p*et        per (n,c)
            jax.ShapeDtypeStruct((n, c, 1), jnp.float32),  # sum p^2         per (n,c)
            jax.ShapeDtypeStruct((n, 1, 1), jnp.float32),  # sum et          per n
        ),
        grid_spec=pltpu.PrefetchScalarGridSpec(
            num_scalar_prefetch=0,
            grid=(n, n_chunks),
            in_specs=[
                pl.BlockSpec((None, c, chunk), lambda i, k: (i, 0, k)),
                pl.BlockSpec((None, 1, chunk), lambda i, k: (i, 0, k)),
            ],
            out_specs=[cls_out_spec, cls_out_spec, cls_out_spec, et_out_spec],
            scratch_shapes=[
                pltpu.VMEM((c, 1), jnp.float32),
                pltpu.VMEM((c, 1), jnp.float32),
                pltpu.VMEM((c, 1), jnp.float32),
                pltpu.VMEM((1, 1), jnp.float32),
            ],
        ),
        compiler_params=pltpu.CompilerParams(
            # N axis can be split across TCs on v7x; chunk axis is the reduction.
            dimension_semantics=("parallel", "arbitrary"),
            vmem_limit_bytes=32 * 1024 * 1024,
        ),
    )(prob3, tgt3)

    # Tiny cross-image reduction + class selection / normalization in plain JAX.
    s_log = jnp.sum(s_log_n[:, :, 0], axis=0)   # (C,)
    s_int = jnp.sum(s_int_n[:, :, 0], axis=0)   # (C,)
    s_p2 = jnp.sum(s_p2_n[:, :, 0], axis=0)     # (C,)
    s_et = jnp.sum(s_et_n)                      # scalar, class-independent

    class_flag = jnp.asarray(class_flag)
    cls = jnp.arange(c)
    include = jnp.logical_or(cls == 0, class_flag == 0)
    n_sel = jnp.sum(include.astype(jnp.float32))

    # l_ce term (safe denominator -> no NaN grads through the zero branch).
    l_ce_sum = jnp.sum(jnp.where(include, s_log, 0.0))
    l_ce_num = n_sel * s_et
    l_ce = jnp.where(l_ce_num > 0,
                     l_ce_sum / jnp.maximum(l_ce_num, 1.0),
                     l_ce_sum)

    # l_dice term: 1 - DiceLoss(prob_c, et) == dice coefficient of class c.
    # sum(et^2) == sum(et) since et is binary.
    dice_c = (1.0 + 2.0 * s_int) / (1.0 + s_p2 + s_et)
    l_dice_sum = jnp.sum(jnp.where(include, dice_c, 0.0))
    l_dice = jnp.where(n_sel > 0,
                       l_dice_sum / jnp.maximum(n_sel, 1.0),
                       0.0)

    return l_ce, l_dice


def _exc_loss_ref(prob, target, class_flag):
    """Pure-JAX reference mirroring the PyTorch module (eager, concrete)."""
    eps = 1.0
    et = (target > 0).astype(jnp.float32)      # (N, 1, H, W)
    l_ce = 0.0
    l_ce_num = 0.0
    l_dice = 0.0
    l_dice_num = 0
    for c in range(prob.shape[1]):
        if c == 0 or int(class_flag[c]) == 0:
            pc = prob[:, c:c + 1].astype(jnp.float32)
            l_ce = l_ce + jnp.sum(et * jnp.log(pc + eps))
            l_ce_num = l_ce_num + jnp.sum(et)
            inter = 1.0 + 2.0 * jnp.sum(pc * et)
            union = 1.0 + jnp.sum(pc ** 2 + et ** 2)
            dice = inter / union                # 1 - BinaryDiceLoss
            l_dice = l_dice + dice              # 1 - DiceLoss == dice
            l_dice_num += 1
    if float(l_ce_num) > 0:
        l_ce = l_ce / l_ce_num
    if l_dice_num > 0:
        l_dice = l_dice / l_dice_num
    return jnp.asarray(l_ce, jnp.float32), jnp.asarray(l_dice, jnp.float32)


if __name__ == "__main__":
    key = jax.random.PRNGKey(0)
    N, C, H, W = 2, 4, 16, 16
    k1, k2 = jax.random.split(key)

    logits = jax.random.normal(k1, (N, C, H, W), dtype=jnp.float32)
    prob = jax.nn.softmax(logits, axis=1)                          # [N, C, H, W]
    target = jax.random.randint(k2, (N, 1, H, W), 0, C)            # int32, native dtype
    class_flag = jnp.array([1, 0, 1, 0], dtype=jnp.int32)          # [C]

    l_ce, l_dice = exc_loss(prob, target, class_flag)
    (l_ce, l_dice) = jax.block_until_ready((l_ce, l_dice))

    l_ce_ref, l_dice_ref = _exc_loss_ref(prob, target, class_flag)
    assert jnp.allclose(l_ce, l_ce_ref, rtol=1e-5, atol=1e-5), (l_ce, l_ce_ref)
    assert jnp.allclose(l_dice, l_dice_ref, rtol=1e-5, atol=1e-5), (l_dice, l_dice_ref)

    print("KERNEL_OK")
</pallas_src>

<mosaic_0001>
module attributes {stable_mosaic.version = 11 : i64} {
  func.func @kernel(%arg0: i32, %arg1: i32, %arg2: memref<1x4x256xf32, #tpu.memory_space<vmem>>, %arg3: memref<1x1x256xi32, #tpu.memory_space<vmem>>, %arg4: memref<1x4x1xf32, #tpu.memory_space<vmem>>, %arg5: memref<1x4x1xf32, #tpu.memory_space<vmem>>, %arg6: memref<1x4x1xf32, #tpu.memory_space<vmem>>, %arg7: memref<1x1x1xf32, #tpu.memory_space<vmem>>, %arg8: memref<4x1xf32, #tpu.memory_space<vmem>>, %arg9: memref<4x1xf32, #tpu.memory_space<vmem>>, %arg10: memref<4x1xf32, #tpu.memory_space<vmem>>, %arg11: memref<1x1xf32, #tpu.memory_space<vmem>>) attributes {dimension_semantics = [#tpu.dimension_semantics<parallel>, #tpu.dimension_semantics<arbitrary>], iteration_bounds = array<i64: 2, 1>, scalar_prefetch = 0 : i64, scratch_operands = 4 : i64, tpu.core_type = #tpu.core_type<tc>, window_params = [{transform_indices = @transform_0, window_bounds = array<i64: 1, 4, 256>}, {transform_indices = @transform_1, window_bounds = array<i64: 1, 1, 256>}, {transform_indices = @transform_2, window_bounds = array<i64: 1, 4, 1>}, {transform_indices = @transform_3, window_bounds = array<i64: 1, 4, 1>}, {transform_indices = @transform_4, window_bounds = array<i64: 1, 4, 1>}, {transform_indices = @transform_5, window_bounds = array<i64: 1, 1, 1>}]} {
    %c0_i32 = arith.constant 0 : i32
    %0 = arith.cmpi eq, %arg1, %c0_i32 : i32
    %1 = arith.extui %0 : i1 to i32
    %c0_i32_0 = arith.constant 0 : i32
    %2 = arith.cmpi ne, %1, %c0_i32_0 : i32
    scf.if %2 {
      %cst_29 = arith.constant 0.000000e+00 : f32
      %42 = vector.broadcast %cst_29 : f32 to vector<4x1xf32>
      %c0_30 = arith.constant 0 : index
      %c0_31 = arith.constant 0 : index
      %43 = vector.load %arg8[%c0_30, %c0_31] : memref<4x1xf32, #tpu.memory_space<vmem>>, vector<4x1xf32>
      tpu.vector_store %arg8[%c0_30, %c0_31], %42 {strides = array<i32>} : memref<4x1xf32, #tpu.memory_space<vmem>>, vector<4x1xf32>,
      %cst_32 = arith.constant 0.000000e+00 : f32
      %44 = vector.broadcast %cst_32 : f32 to vector<4x1xf32>
      %c0_33 = arith.constant 0 : index
      %c0_34 = arith.constant 0 : index
      %45 = vector.load %arg9[%c0_33, %c0_34] : memref<4x1xf32, #tpu.memory_space<vmem>>, vector<4x1xf32>
      tpu.vector_store %arg9[%c0_33, %c0_34], %44 {strides = array<i32>} : memref<4x1xf32, #tpu.memory_space<vmem>>, vector<4x1xf32>,
      %cst_35 = arith.constant 0.000000e+00 : f32
      %46 = vector.broadcast %cst_35 : f32 to vector<4x1xf32>
      %c0_36 = arith.constant 0 : index
      %c0_37 = arith.constant 0 : index
      %47 = vector.load %arg10[%c0_36, %c0_37] : memref<4x1xf32, #tpu.memory_space<vmem>>, vector<4x1xf32>
      tpu.vector_store %arg10[%c0_36, %c0_37], %46 {strides = array<i32>} : memref<4x1xf32, #tpu.memory_space<vmem>>, vector<4x1xf32>,
      %cst_38 = arith.constant 0.000000e+00 : f32
      %48 = vector.broadcast %cst_38 : f32 to vector<1x1xf32>
      %c0_39 = arith.constant 0 : index
      %c0_40 = arith.constant 0 : index
      %49 = vector.load %arg11[%c0_39, %c0_40] : memref<1x1xf32, #tpu.memory_space<vmem>>, vector<1x1xf32>
      tpu.vector_store %arg11[%c0_39, %c0_40], %48 {strides = array<i32>} : memref<1x1xf32, #tpu.memory_space<vmem>>, vector<1x1xf32>,
    } else {
    }
    %c0 = arith.constant 0 : index
    %c0_1 = arith.constant 0 : index
    %c0_2 = arith.constant 0 : index
    %3 = vector.load %arg2[%c0, %c0_1, %c0_2] : memref<1x4x256xf32, #tpu.memory_space<vmem>>, vector<1x4x256xf32>
    %4 = vector.shape_cast %3 : vector<1x4x256xf32> to vector<4x256xf32>
    %c0_3 = arith.constant 0 : index
    %c0_4 = arith.constant 0 : index
    %c0_5 = arith.constant 0 : index
    %5 = vector.load %arg3[%c0_3, %c0_4, %c0_5] : memref<1x1x256xi32, #tpu.memory_space<vmem>>, vector<1x1x256xi32>
    %6 = vector.shape_cast %5 : vector<1x1x256xi32> to vector<1x256xi32>
    %c0_i32_6 = arith.constant 0 : i32
    %7 = vector.broadcast %c0_i32_6 : i32 to vector<1x256xi32>
    %8 = arith.cmpi sgt, %6, %7 : vector<1x256xi32>
    %9 = arith.extui %8 : vector<1x256xi1> to vector<1x256xi32>
    %10 = arith.sitofp %9 : vector<1x256xi32> to vector<1x256xf32>
    %11 = vector.shape_cast %10 : vector<1x256xf32> to vector<1x256xf32>
    %12 = vector.broadcast %11 : vector<1x256xf32> to vector<4x256xf32>
    %c0_7 = arith.constant 0 : index
    %c0_8 = arith.constant 0 : index
    %13 = vector.load %arg8[%c0_7, %c0_8] : memref<4x1xf32, #tpu.memory_space<vmem>>, vector<4x1xf32>
    %cst = arith.constant 1.000000e+00 : f32
    %14 = vector.broadcast %cst : f32 to vector<4x256xf32>
    %15 = arith.addf %4, %14 : vector<4x256xf32>
    %16 = math.log %15 : vector<4x256xf32>
    %17 = arith.mulf %12, %16 : vector<4x256xf32>
    %cst_9 = arith.constant dense<0.000000e+00> : vector<4xf32>
    %18 = vector.multi_reduction <add>, %17, %cst_9 [1] : vector<4x256xf32> to vector<4xf32>
    %19 = vector.shape_cast %18 : vector<4xf32> to vector<4x1xf32>
    %20 = arith.addf %13, %19 : vector<4x1xf32>
    %c0_10 = arith.constant 0 : index
    %c0_11 = arith.constant 0 : index
    %21 = vector.load %arg8[%c0_10, %c0_11] : memref<4x1xf32, #tpu.memory_space<vmem>>, vector<4x1xf32>
    tpu.vector_store %arg8[%c0_10, %c0_11], %20 {strides = array<i32>} : memref<4x1xf32, #tpu.memory_space<vmem>>, vector<4x1xf32>,
    %c0_12 = arith.constant 0 : index
    %c0_13 = arith.constant 0 : index
    %22 = vector.load %arg9[%c0_12, %c0_13] : memref<4x1xf32, #tpu.memory_space<vmem>>, vector<4x1xf32>
    %23 = arith.mulf %12, %4 : vector<4x256xf32>
    %cst_14 = arith.constant dense<0.000000e+00> : vector<4xf32>
    %24 = vector.multi_reduction <add>, %23, %cst_14 [1] : vector<4x256xf32> to vector<4xf32>
    %25 = vector.shape_cast %24 : vector<4xf32> to vector<4x1xf32>
    %26 = arith.addf %22, %25 : vector<4x1xf32>
    %c0_15 = arith.constant 0 : index
    %c0_16 = arith.constant 0 : index
    %27 = vector.load %arg9[%c0_15, %c0_16] : memref<4x1xf32, #tpu.memory_space<vmem>>, vector<4x1xf32>
    tpu.vector_store %arg9[%c0_15, %c0_16], %26 {strides = array<i32>} : memref<4x1xf32, #tpu.memory_space<vmem>>, vector<4x1xf32>,
    %c0_17 = arith.constant 0 : index
    %c0_18 = arith.constant 0 : index
    %28 = vector.load %arg10[%c0_17, %c0_18] : memref<4x1xf32, #tpu.memory_space<vmem>>, vector<4x1xf32>
    %29 = arith.mulf %4, %4 : vector<4x256xf32>
    %cst_19 = arith.constant dense<0.000000e+00> : vector<4xf32>
    %30 = vector.multi_reduction <add>, %29, %cst_19 [1] : vector<4x256xf32> to vector<4xf32>
    %31 = vector.shape_cast %30 : vector<4xf32> to vector<4x1xf32>
    %32 = arith.addf %28, %31 : vector<4x1xf32>
    %c0_20 = arith.constant 0 : index
    %c0_21 = arith.constant 0 : index
    %33 = vector.load %arg10[%c0_20, %c0_21] : memref<4x1xf32, #tpu.memory_space<vmem>>, vector<4x1xf32>
    tpu.vector_store %arg10[%c0_20, %c0_21], %32 {strides = array<i32>} : memref<4x1xf32, #tpu.memory_space<vmem>>, vector<4x1xf32>,
    %c0_22 = arith.constant 0 : index
    %c0_23 = arith.constant 0 : index
    %34 = vector.load %arg11[%c0_22, %c0_23] : memref<1x1xf32, #tpu.memory_space<vmem>>, vector<1x1xf32>
    %cst_24 = arith.constant dense<0.000000e+00> : vector<1xf32>
    %35 = vector.multi_reduction <add>, %10, %cst_24 [1] : vector<1x256xf32> to vector<1xf32>
    %36 = vector.shape_cast %35 : vector<1xf32> to vector<1x1xf32>
    %37 = arith.addf %34, %36 : vector<1x1xf32>
    %c0_25 = arith.constant 0 : index
    %c0_26 = arith.constant 0 : index
    %38 = vector.load %arg11[%c0_25, %c0_26] : memref<1x1xf32, #tpu.memory_space<vmem>>, vector<1x1xf32>
    tpu.vector_store %arg11[%c0_25, %c0_26], %37 {strides = array<i32>} : memref<1x1xf32, #tpu.memory_space<vmem>>, vector<1x1xf32>,
    %c0_i32_27 = arith.constant 0 : i32
    %39 = arith.cmpi eq, %arg1, %c0_i32_27 : i32
    %40 = arith.extui %39 : i1 to i32
    %c0_i32_28 = arith.constant 0 : i32
    %41 = arith.cmpi ne, %40, %c0_i32_28 : i32
    scf.if %41 {
      %c0_29 = arith.constant 0 : index
      %c0_30 = arith.constant 0 : index
      %42 = vector.load %arg8[%c0_29, %c0_30] : memref<4x1xf32, #tpu.memory_space<vmem>>, vector<4x1xf32>
      %c0_31 = arith.constant 0 : index
      %c0_32 = arith.constant 0 : index
      %c0_33 = arith.constant 0 : index
      %43 = vector.load %arg4[%c0_31, %c0_32, %c0_33] : memref<1x4x1xf32, #tpu.memory_space<vmem>>, vector<1x4x1xf32>
      %44 = vector.shape_cast %43 : vector<1x4x1xf32> to vector<4x1xf32>
      %45 = vector.shape_cast %42 : vector<4x1xf32> to vector<1x4x1xf32>
      tpu.vector_store %arg4[%c0_31, %c0_32, %c0_33], %45 {strides = array<i32>} : memref<1x4x1xf32, #tpu.memory_space<vmem>>, vector<1x4x1xf32>,
      %c0_34 = arith.constant 0 : index
      %c0_35 = arith.constant 0 : index
      %46 = vector.load %arg9[%c0_34, %c0_35] : memref<4x1xf32, #tpu.memory_space<vmem>>, vector<4x1xf32>
      %c0_36 = arith.constant 0 : index
      %c0_37 = arith.constant 0 : index
      %c0_38 = arith.constant 0 : index
      %47 = vector.load %arg5[%c0_36, %c0_37, %c0_38] : memref<1x4x1xf32, #tpu.memory_space<vmem>>, vector<1x4x1xf32>
      %48 = vector.shape_cast %47 : vector<1x4x1xf32> to vector<4x1xf32>
      %49 = vector.shape_cast %46 : vector<4x1xf32> to vector<1x4x1xf32>
      tpu.vector_store %arg5[%c0_36, %c0_37, %c0_38], %49 {strides = array<i32>} : memref<1x4x1xf32, #tpu.memory_space<vmem>>, vector<1x4x1xf32>,
      %c0_39 = arith.constant 0 : index
      %c0_40 = arith.constant 0 : index
      %50 = vector.load %arg10[%c0_39, %c0_40] : memref<4x1xf32, #tpu.memory_space<vmem>>, vector<4x1xf32>
      %c0_41 = arith.constant 0 : index
      %c0_42 = arith.constant 0 : index
      %c0_43 = arith.constant 0 : index
      %51 = vector.load %arg6[%c0_41, %c0_42, %c0_43] : memref<1x4x1xf32, #tpu.memory_space<vmem>>, vector<1x4x1xf32>
      %52 = vector.shape_cast %51 : vector<1x4x1xf32> to vector<4x1xf32>
      %53 = vector.shape_cast %50 : vector<4x1xf32> to vector<1x4x1xf32>
      tpu.vector_store %arg6[%c0_41, %c0_42, %c0_43], %53 {strides = array<i32>} : memref<1x4x1xf32, #tpu.memory_space<vmem>>, vector<1x4x1xf32>,
      %c0_44 = arith.constant 0 : index
      %c0_45 = arith.constant 0 : index
      %54 = vector.load %arg11[%c0_44, %c0_45] : memref<1x1xf32, #tpu.memory_space<vmem>>, vector<1x1xf32>
      %c0_46 = arith.constant 0 : index
      %c0_47 = arith.constant 0 : index
      %c0_48 = arith.constant 0 : index
      %55 = vector.load %arg7[%c0_46, %c0_47, %c0_48] : memref<1x1x1xf32, #tpu.memory_space<vmem>>, vector<1x1x1xf32>
      %56 = vector.shape_cast %55 : vector<1x1x1xf32> to vector<1x1xf32>
      %57 = vector.shape_cast %54 : vector<1x1xf32> to vector<1x1x1xf32>
      tpu.vector_store %arg7[%c0_46, %c0_47, %c0_48], %57 {strides = array<i32>} : memref<1x1x1xf32, #tpu.memory_space<vmem>>, vector<1x1x1xf32>,
    } else {
    }
    return
  }
  func.func @transform_0(%arg0: i32, %arg1: i32) -> (i32, i32, i32) {
    %c0_i32 = arith.constant 0 : i32
    %c0_i32_0 = arith.constant 0 : i32
    return %arg0, %c0_i32, %arg1 : i32, i32, i32
  }
  func.func @transform_1(%arg0: i32, %arg1: i32) -> (i32, i32, i32) {
    %c0_i32 = arith.constant 0 : i32
    %c0_i32_0 = arith.constant 0 : i32
    return %arg0, %c0_i32, %arg1 : i32, i32, i32
  }
  func.func @transform_2(%arg0: i32, %arg1: i32) -> (i32, i32, i32) {
    %c0_i32 = arith.constant 0 : i32
    %c0_i32_0 = arith.constant 0 : i32
    %c0_i32_1 = arith.constant 0 : i32
    return %arg0, %c0_i32, %c0_i32_0 : i32, i32, i32
  }
  func.func @transform_3(%arg0: i32, %arg1: i32) -> (i32, i32, i32) {
    %c0_i32 = arith.constant 0 : i32
    %c0_i32_0 = arith.constant 0 : i32
    %c0_i32_1 = arith.constant 0 : i32
    return %arg0, %c0_i32, %c0_i32_0 : i32, i32, i32
  }
  func.func @transform_4(%arg0: i32, %arg1: i32) -> (i32, i32, i32) {
    %c0_i32 = arith.constant 0 : i32
    %c0_i32_0 = arith.constant 0 : i32
    %c0_i32_1 = arith.constant 0 : i32
    return %arg0, %c0_i32, %c0_i32_0 : i32, i32, i32
  }
  func.func @transform_5(%arg0: i32, %arg1: i32) -> (i32, i32, i32) {
    %c0_i32 = arith.constant 0 : i32
    %c0_i32_0 = arith.constant 0 : i32
    %c0_i32_1 = arith.constant 0 : i32
    return %arg0, %c0_i32, %c0_i32_0 : i32, i32, i32
  }
}

</mosaic_0001>

<bundles_post_ra>
// kernel: tpu_custom_call.1
= control target key start
LH: loop header
LB: loop body
LE: loop exit
PB: predicated region body
PF: predicated region fallthrough
CT: control target
= control target key end

     0   :  { %11 = vsyncpa [#allocation7], 0  ;;  %s974_s0 = inlined_call_operand.hbm [shape: f32[2,4,256], index: 0, kind: input, shape index: {}]   ;;  %s975_s1 = inlined_call_operand.hbm [shape: s32[2,1,256], index: 1, kind: input, shape index: {}]   ;;  %s976_s2 = inlined_call_operand.vmem [shape: f32[2,4,1], index: 2, kind: output, shape index: {0}]   ;;  %s977_s3 = inlined_call_operand.vmem [shape: f32[2,4,1], index: 3, kind: output, shape index: {1}]   ;;  %s978_s4 = inlined_call_operand.vmem [shape: f32[2,4,1], index: 4, kind: output, shape index: {2}]   ;;  %s979_s5 = inlined_call_operand.vmem [shape: f32[2,1,1], index: 5, kind: output, shape index: {3}]  }
   0x1   :  { %13 = vsyncpa [#allocation7 + $0x1], 0 }
   0x2   :  { %14 = vsyncpa [#allocation9], 0 }
   0x3   :  { %16 = vsyncpa [#allocation9 + $0x1], 0  ;;  %s843_s18 = smov 0   ;;  %s845_s19 = smov 0  }
   0x4   :  { %s847_s20 = smov 0   ;;  %s849_s21 = smov 0  }
   0x5   :  { %s851_s22 = smov 0   ;;  %s853_s23 = smov 0  }
   0x6 LB: > { %s614_s24 = sadd.s32 4294967295, %s810_s23   ;;  %s34_s25 = sadd.s32 1, %s806_s22  ;;  %s810_s23 = sphi %s853_s23, %s22_s23   ;;  %s806_s22 = sphi %s851_s22, %s987_s22   ;;  %s802_s21 = sphi %s849_s21, %s986_s21   ;;  %s798_s20 = sphi %s847_s20, %s985_s20   ;;  %s794_s19 = sphi %s845_s19, %s984_s19   ;;  %s790_s18 = sphi %s843_s18, %s983_s18  }
   0x7   : > { %p36_p0 = scmp.ge.s32.totalorder %s34_s25, 2  ;;  %s43_s26 = sadd.s32 1, %s798_s20 }
   0x8   : > { %p50_p1 = scmp.ne.s32.totalorder %s798_s20, %s794_s19  ;;  %p51_p2 = scmp.eq.s32.totalorder %s810_s23, 0 }
   0x9   : > { %s989_s25 = smov (%p36_p0, %s34_s25), 0  ;;  %p56_p4 = scmp.ne.s32.totalorder %s794_s19, %s790_s18 }
   0xa   : > { %p879_p3 = por %p51_p2, %p50_p1  ;;  %s38_s28 = ssub.s32 %s806_s22, %s989_s25 }
   0xb   : > { %p57_p5 = scmp.eq.s32.totalorder %s614_s24, 0  ;;  %p41_p6 = scmp.eq.s32.totalorder %s38_s28, 0 }
   0xc   : > { %p644_p8 = scmp.lt.s32.totalorder %s810_s23, 2  ;;  %s212_s6 = sand.u32 1, %s798_s20  }
   0xd   : > { %p886_p7 = por %p57_p5, %p56_p4  ;;  %s632_s7 = sshll.u32 %s806_s22, 3 }
   0xe   : > { %s892_s30 = scalar_select %p41_p6, %s798_s20, %s43_s26  }
   0xf   : > { %s618_s8 = sshll.u32 %s212_s6, 3  ;;  %s223_s11 = scalar_lea.hbm %s974_s0, %s632_s7 }
  0x10   : > { %s225_s12 = sshll.u32 %s223_s11, 4  ;;  %s216_s13 = scalar_lea.vmem [#allocation6], %s618_s8  ;;  %s226_s12 = int_to_ptr.hbm [resolvable:$true] %s225_s12 }
  0x11   : > { %s227_s14 = sshll.u32 %s216_s13, 4  ;;  %p901_p9 = pnand %p644_p8, %p879_p3  ;;  %s228_s14 = int_to_ptr.vmem [resolvable:$true] %s227_s14 }
  0x12   : > { %p623_p10 = scmp.ge.s32.totalorder %s810_s23, 1  ;;  %p253_p11 = scmp.lt.s32.totalorder %s810_s23, 3 }
  0x13   : > { %s621_s16 = sshll.u32 %s212_s6, 1  ;;  %s213_s17 = scalar_lea.sflag [#allocation7], %s212_s6 }
  0x14   : > { %640 = dma.hbm_to_vmem [thread:$0]  (!%p901_p9), %s226_s12, 128, %s228_s14, %s213_s17  }
  0x15   : > { %p254_p12 = pnand %p623_p10, %p253_p11  ;;  %s622_s18 = sshll.u32 %s806_s22, 1 }
  0x16   : > { %s238_s24 = scalar_lea.vmem [#allocation8], %s621_s16  ;;  %s244_s27 = scalar_lea.hbm %s975_s1, %s622_s18 }
  0x17   : > { %s248_s26 = sshll.u32 %s238_s24, 4  ;;  %s246_s8 = sshll.u32 %s244_s27, 4  ;;  %s249_s26 = int_to_ptr.vmem [resolvable:$true] %s248_s26  ;;  %s247_s8 = int_to_ptr.hbm [resolvable:$true] %s246_s8 }
  0x18   : > { %s235_s9 = scalar_lea.sflag [#allocation9], %s212_s6  ;;  %257 = sbr.rel (%p254_p12) target bundleno = 207 (0xcf), region = 28 }
  0x19   : > { %643 = dma.hbm_to_vmem [thread:$0]  (!%p901_p9), %s247_s8, 32, %s249_s26, %s235_s9  }
  0x1a   : > { %s259_s10 = sand.u32 (!%p254_p12), 1, %s794_s19  }
  0x1b   : > { %s624_s11 = sshll.u32 (!%p254_p12), %s259_s10, 3  ;;  %s260_s12 = scalar_lea.sflag (!%p254_p12), [#allocation7], %s259_s10 }
  0x1c   : > { %s263_s13 = scalar_lea.vmem (!%p254_p12), [#allocation6], %s624_s11 }
  0x1d   : > { %781 = dma.done.wait (%p886_p7), %s260_s12, 128  }
  0x1e   : > { %783 = vsyncadd (%p886_p7), %s260_s12, 4294967168  ;;  %s625_s14 = sshll.u32 %s259_s10, 1  ;;  %s270_s16 = scalar_lea.sflag [#allocation9], %s259_s10 }
  0x1f   : > { %s273_s17 = scalar_lea.vmem [#allocation8], %s625_s14 }
  0x20   : > { %785 = dma.done.wait (%p886_p7), %s270_s16, 32  }
  0x21   : > { %787 = vsyncadd (%p886_p7), %s270_s16, 4294967264  ;;  %v343_v0 = vld [vmem:[%s263_s13] sm:$0xff]  ;;  %v344_v2 = vld [vmem:[%s273_s17] sm:$0x3]  ;;  %v812_v5 = vmov 0.0   ;;  %vm337_vm1 = vcmask 3072  }
  0x22   : > { %v354_v1 = vadd.f32 1.0, %v343_v0  ;;  %vm345_vm0 = vcmp.gt.s32.totalorder %v344_v2, 0  ;;  %340 = vst.msk [vmem:[#allocation4] sm:$0xf] %vm337_vm1, %v812_v5  ;;  %vm365_vm2 = vcmask 1043456   ;;  %v391_v16 = vmul.f32 %v343_v0, %v343_v0  ;;  %p318_p13 = scmp.lt.s32.totalorder %s802_s21, 1 }
  0x23   : > { %v629_v6 = vsel %vm345_vm0, 1.0, %v812_v5  ;;  %338 = vst.msk [vmem:[#allocation2] sm:$0xf] %vm337_vm1, %v812_v5  ;;  %vm406_vm3 = vcmask 1040384   ;;  %vm341_vm4 = vcmask 0  }
  0x24   : > { %694 = vlog2.f32 %v354_v1  ;;  %v349_v7 = vperm.slane %v629_v6, 0  ;;  %v350_v8 = vperm.slane %v629_v6, 1  ;;  %339 = vst.msk [vmem:[#allocation3] sm:$0xf] %vm337_vm1, %v812_v5  ;;  %s991_s21 = smov (!%p318_p13, %s802_s21), 1 }
  0x25   : > { %342 = vst.msk [vmem:[#allocation5] sm:$0x1] %vm341_vm4, %v812_v5  ;;  %s626_s29 = sshll.u32 %s991_s21, 2  ;;  %s332_s11 = scalar_lea.vmem %s979_s5, %s991_s21 }
  0x26   : > { %v407_v29 = vsel %vm406_vm3, %v349_v7, 0.0  ;;  %v408_v30 = vsel %vm406_vm3, %v350_v8, 0.0  ;;  %s321_s18 = scalar_lea.vmem %s976_s2, %s626_s29  ;;  %s325_s28 = scalar_lea.vmem %s977_s3, %s626_s29 }
  0x27   : > { %v409_v31 = vadd.f32 %v408_v30, %v407_v29  ;;  %s329_s8 = scalar_lea.vmem %s978_s4, %s626_s29 }
  0x29   : > { %v390_v39 = vld [vmem:[#allocation4] sm:$0xf] }
  0x2a   : > { %v695_v3 = vpop.eup %694  ;;  %v353_v32 = vld [vmem:[#allocation2] sm:$0xf] }
  0x2b   : > { %v356_v4 = vmul.f32 0.6931472, %v695_v3  ;;  %v374_v35 = vld [vmem:[#allocation3] sm:$0xf] }
  0x2c   : > { %v405_v43 = vld [vmem:[#allocation5] sm:$0x1] }
  0x2d   : > { %358 = vst [vmem:[#allocation1] ss:$2 sm:$0xff] %v356_v4 }
  0x34   : > { %v359_v9 = vld.sshfl [vmem:[#allocation1] sm:$0xff pattern:$0x75316420]  ;;  %v360_v10 = vld.sshfl [vmem:[#allocation1 + $0x8] sm:$0xff pattern:$0x75316420] }
  0x35   : > { %376 = vst [vmem:[#allocation1] ss:$2 sm:$0xff] %v343_v0  ;;  %v363_v11 = vmul.f32 %v359_v9, %v349_v7  ;;  %v364_v12 = vmul.f32 %v360_v10, %v350_v8 }
  0x37   : > { %v366_v13 = vsel %vm365_vm2, %v363_v11, 0.0  ;;  %v367_v14 = vsel %vm365_vm2, %v364_v12, 0.0 }
  0x38   : > { %v368_v15 = vadd.f32 %v367_v14, %v366_v13 }
  0x3a   : > { %369 = vadd.xlane.f32.xlu0 %v368_v15 }
  0x3c   : > { %v377_v17 = vld.sshfl [vmem:[#allocation1] sm:$0xff pattern:$0x75316420]  ;;  %v378_v18 = vld.sshfl [vmem:[#allocation1 + $0x8] sm:$0xff pattern:$0x75316420] }
  0x3d   : > { %393 = vst [vmem:[#allocation1] ss:$2 sm:$0xff] %v391_v16  ;;  %v381_v19 = vmul.f32 %v377_v17, %v349_v7  ;;  %v382_v20 = vmul.f32 %v378_v18, %v350_v8 }
  0x3f   : > { %v383_v21 = vsel %vm365_vm2, %v381_v19, 0.0  ;;  %v384_v22 = vsel %vm365_vm2, %v382_v20, 0.0 }
  0x40   : > { %v385_v23 = vadd.f32 %v384_v22, %v383_v21 }
  0x42   : > { %386 = vadd.xlane.f32.xlu0 %v385_v23 }
  0x44   : > { %v394_v24 = vld.sshfl [vmem:[#allocation1] sm:$0xff pattern:$0x75316420]  ;;  %v395_v25 = vld.sshfl [vmem:[#allocation1 + $0x8] sm:$0xff pattern:$0x75316420] }
  0x45   : > { %v398_v26 = vsel %vm365_vm2, %v394_v24, 0.0  ;;  %v399_v27 = vsel %vm365_vm2, %v395_v25, 0.0 }
  0x46   : > { %v400_v28 = vadd.f32 %v399_v27, %v398_v26 }
  0x48   : > { %401 = vadd.xlane.f32.xlu1 %v400_v28 }
  0x50   : > { %410 = vadd.xlane.f32.xlu1 %v409_v31 }
  0xad   : > { %v370_v33 = vpop.xlane.xlu0 %369 }
  0xae   : > { %v371_v34 = vadd.f32 %v370_v33, %v353_v32 }
  0xb0   : > { %373 = vst.msk [vmem:[#allocation2] sm:$0xf] %vm337_vm1, %v371_v34 }
  0xb5   : > { %v387_v36 = vpop.xlane.xlu0 %386 }
  0xb6   : > { %v388_v37 = vadd.f32 %v387_v36, %v374_v35 }
  0xb7   : > { %v418_v38 = vld [vmem:[#allocation2] sm:$0xf] }
  0xb8   : > { %419 = vst.msk [vmem:[%s321_s18] sm:$0xf] %vm337_vm1, %v418_v38 }
  0xb9   : > { %389 = vst.msk [vmem:[#allocation3] sm:$0xf] %vm337_vm1, %v388_v37 }
  0xbb   : > { %v402_v40 = vpop.xlane.xlu1 %401 }
  0xbc   : > { %v403_v41 = vadd.f32 %v402_v40, %v390_v39 }
  0xbe   : > { %404 = vst.msk [vmem:[#allocation4] sm:$0xf] %vm337_vm1, %v403_v41 }
  0xc0   : > { %v420_v42 = vld [vmem:[#allocation3] sm:$0xf] }
  0xc1   : > { %421 = vst.msk [vmem:[%s325_s28] sm:$0xf] %vm337_vm1, %v420_v42 }
  0xc3   : > { %v411_v44 = vpop.xlane.xlu1 %410 }
  0xc4   : > { %v412_v45 = vadd.f32 %v411_v44, %v405_v43 }
  0xc5   : > { %v422_v46 = vld [vmem:[#allocation4] sm:$0xf] }
  0xc6   : > { %414 = vst.msk [vmem:[#allocation5] sm:$0x1] %vm341_vm4, %v412_v45 }
  0xc7   : > { %423 = vst.msk [vmem:[%s329_s8] sm:$0xf] %vm337_vm1, %v422_v46 }
  0xcd   : > { %v424_v47 = vld [vmem:[#allocation5] sm:$0x1] }
  0xce   : > { %425 = vst.msk [vmem:[%s332_s11] sm:$0x1] %vm341_vm4, %v424_v47 }
  0xcf PF: > { %s22_s23 = sadd.s32 1, %s810_s23   ;;  %s983_s18 = smov %s794_s19 }
  0xd0   : > { %p19_p0 = scmp.ge.s32.totalorder %s22_s23, 4   ;;  %s984_s19 = smov %s798_s20 }
  0xd1   : > { %s985_s20 = smov %s892_s30  ;;  %s986_s21 = smov %s806_s22 }
  0xd2   : > { %s987_s22 = smov %s989_s25  ;;  %21 = sbr.rel (!%p19_p0) target bundleno = 6 (0x6), region = 125 }
  0xd7   :  { %485 = vsyncpa [#allocation7], 1 }
  0xd8   :  { %487 = vsyncpa [#allocation7 + $0x1], 1 }
  0xd9   :  { %488 = vsyncpa [#allocation9], 1 }
  0xda   :  { %490 = vsyncpa [#allocation9 + $0x1], 1 }

</bundles_post_ra>
